<compile_context>
chip_gen: v6e
topology: v6e:2x2x1
jax: 0.10.0
libtpu: 0.0.40
codegen_flags: <defaults>
</compile_context>

<pallas_src>
import jax
import jax.numpy as jnp
from jax.experimental import pallas as pl
from jax.experimental.pallas import tpu as pltpu

# ---- module configuration (mirrors Config / gen) ----------------------------
IN_SIZE = 64          # digits: 8x8 pixels
OUT_SIZE = 10         # 10 classes
OUT_PAD = 128         # lane-dense padded class axis
GEN = (32, 48, 16)    # genome: hidden layer sizes
BATCH = 32            # Config.batch_size['train'] (small demo batch)
TM_MAX = 512          # rows per grid step for large batches (~0.5 MiB/tile of VMEM)


def _fused_mlp_kernel(x_ref, lab_ref, w_in_ref, w_h0_ref, w_h1_ref, w_out_ref,
                      probs_ref, stats_ref):
    """One batch tile: fused MLP + softmax + (loss, accuracy) partial sums."""
    x = x_ref[...]                          # (TM, 64)  bf16
    label = lab_ref[...]                    # (TM, 1)   int32, -1 for padded rows

    # bf16 operands into the MXU, f32 accumulation, f32 relu on the VPU.
    h = jnp.maximum(jnp.dot(x, w_in_ref[...],
                            preferred_element_type=jnp.float32), 0.0)
    h = jnp.maximum(jnp.dot(h.astype(jnp.bfloat16), w_h0_ref[...],
                            preferred_element_type=jnp.float32), 0.0)
    h = jnp.maximum(jnp.dot(h.astype(jnp.bfloat16), w_h1_ref[...],
                            preferred_element_type=jnp.float32), 0.0)
    logits = jnp.dot(h.astype(jnp.bfloat16), w_out_ref[...],
                     preferred_element_type=jnp.float32)        # (TM, 128) f32

    lane = jax.lax.broadcasted_iota(jnp.int32, logits.shape, 1)
    valid = lane < OUT_SIZE
    logits = jnp.where(valid, logits, -1e30)                    # mask padded classes

    # numerically stable softmax over the 10 valid classes
    m = jnp.max(logits, axis=1, keepdims=True)
    e = jnp.exp(logits - m)                                     # padded lanes -> 0
    denom = jnp.sum(e, axis=1, keepdims=True)
    inv = pl.reciprocal(denom, approx=True)                     # EUP slot
    inv = inv * (2.0 - denom * inv)                             # one Newton step (VPU)
    probs = e * inv
    probs_ref[...] = probs.astype(probs_ref.dtype)              # bf16 lane-dense writeback

    # --- fused loss / accuracy (reference applies CrossEntropyLoss to probs) --
    onehot = lane == label                                      # in-kernel one-hot mask
    p_valid = jnp.where(valid, probs, -1e30)
    m2 = jnp.max(p_valid, axis=1, keepdims=True)                # max prob per row
    lse = m2 + jnp.log(jnp.sum(jnp.exp(p_valid - m2), axis=1, keepdims=True))
    log_sm = probs - lse
    loss_sum = jnp.sum(jnp.where(onehot, -log_sm, 0.0))         # padded rows contribute 0

    label_prob = jnp.sum(jnp.where(onehot, probs, 0.0), axis=1, keepdims=True)
    correct = jnp.sum((label_prob >= m2).astype(jnp.float32))   # padded rows never count

    row = jax.lax.broadcasted_iota(jnp.int32, stats_ref.shape, 1)
    col = jax.lax.broadcasted_iota(jnp.int32, stats_ref.shape, 2)
    stats_ref[...] = jnp.where((row == 0) & (col == 0), loss_sum,
                               jnp.where((row == 0) & (col == 1), correct, 0.0))


def init_params(key):
    """Deterministic init, nn.Linear(in, out, bias=False)-style.

    Weights stored pre-transposed [in, out] in bf16; w_out zero-padded 10 -> 128 lanes.
    """
    k0, k1, k2, k3 = jax.random.split(key, 4)

    def linear_w(k, in_f, out_f):
        bound = 1.0 / (in_f ** 0.5)
        w = jax.random.uniform(k, (out_f, in_f), jnp.float32, -bound, bound)
        return w.T  # [in, out]

    w_out = linear_w(k3, GEN[2], OUT_SIZE)                      # [16, 10]
    w_out_pad = jnp.zeros((GEN[2], OUT_PAD), jnp.float32).at[:, :OUT_SIZE].set(w_out)

    return {
        "w_in":  linear_w(k0, IN_SIZE, GEN[0]).astype(jnp.bfloat16),
        "w_h0":  linear_w(k1, GEN[0], GEN[1]).astype(jnp.bfloat16),
        "w_h1":  linear_w(k2, GEN[1], GEN[2]).astype(jnp.bfloat16),
        "w_out": w_out_pad.astype(jnp.bfloat16),
    }


def _round_up(v, m):
    return ((v + m - 1) // m) * m


def network_forward(x, params, labels=None):
    """Returns (probs, loss, err) like the torch module (loss/err None w/o labels)."""
    n = x.shape[0]
    tm = min(_round_up(n, 8), TM_MAX)       # batch 32 -> one 32-row tile, no padding
    n_pad = _round_up(n, tm)
    num_tiles = n_pad // tm

    x_bf = x.astype(jnp.bfloat16)
    lab = (jnp.full((n,), -1, jnp.int32) if labels is None
           else labels.astype(jnp.int32))
    if n_pad != n:
        x_bf = jnp.pad(x_bf, ((0, n_pad - n), (0, 0)))
        lab = jnp.pad(lab, (0, n_pad - n), constant_values=-1)
    lab = lab.reshape(n_pad, 1)

    flops = 2 * n_pad * (IN_SIZE * GEN[0] + GEN[0] * GEN[1]
                         + GEN[1] * GEN[2] + GEN[2] * OUT_PAD)
    bytes_accessed = (int(x_bf.size) * 2 + int(lab.size) * 4
                      + sum(int(w.size) * 2 for w in params.values())
                      + n_pad * OUT_PAD * 2 + num_tiles * 8 * OUT_PAD * 4)
    cost = pl.CostEstimate(flops=flops,
                           transcendentals=2 * n_pad * OUT_PAD,
                           bytes_accessed=bytes_accessed)

    probs_pad, stats = pl.pallas_call(
        _fused_mlp_kernel,
        out_shape=(jax.ShapeDtypeStruct((n_pad, OUT_PAD), jnp.bfloat16),
                   jax.ShapeDtypeStruct((num_tiles, 8, OUT_PAD), jnp.float32)),
        grid=(num_tiles,),
        in_specs=[
            pl.BlockSpec((tm, IN_SIZE), lambda i: (i, 0)),          # x tile (bf16)
            pl.BlockSpec((tm, 1), lambda i: (i, 0)),                # int32 labels
            pl.BlockSpec((IN_SIZE, GEN[0]), lambda i: (0, 0)),      # weights stay
            pl.BlockSpec((GEN[0], GEN[1]), lambda i: (0, 0)),       #   VMEM-resident
            pl.BlockSpec((GEN[1], GEN[2]), lambda i: (0, 0)),
            pl.BlockSpec((GEN[2], OUT_PAD), lambda i: (0, 0)),
        ],
        out_specs=(
            pl.BlockSpec((tm, OUT_PAD), lambda i: (i, 0)),          # lane-dense bf16 probs
            pl.BlockSpec((1, 8, OUT_PAD), lambda i: (i, 0, 0)),     # per-tile stats
        ),
        compiler_params=pltpu.CompilerParams(
            dimension_semantics=("parallel",)),                     # v7x: 2 TCs split grid
        cost_estimate=cost,
    )(x_bf, lab, params["w_in"], params["w_h0"], params["w_h1"], params["w_out"])

    probs = probs_pad[:n, :OUT_SIZE].astype(jnp.float32)
    if labels is None:
        return probs, None, None

    loss = jnp.sum(stats[:, 0, 0]) / n
    err = 1.0 - jnp.sum(stats[:, 0, 1]) / n
    return probs, loss, err


if __name__ == "__main__":
    key = jax.random.PRNGKey(0)
    k_x, k_t, k_p = jax.random.split(key, 3)

    # digits-like inputs: pixel intensities in [0, 16)
    x = jax.random.uniform(k_x, (BATCH, IN_SIZE), jnp.float32, 0.0, 16.0)
    labels = jax.random.randint(k_t, (BATCH,), 0, OUT_SIZE)

    params = init_params(k_p)

    probs, loss, err = network_forward(x, params, labels)
    jax.block_until_ready((probs, loss, err))

    # sanity: shapes, softmax rows sum to ~1 (bf16 probs writeback -> 1e-2 tol), finite stats
    assert probs.shape == (BATCH, OUT_SIZE)
    assert bool(jnp.allclose(jnp.sum(probs, axis=1), 1.0, atol=1e-2))
    assert bool(jnp.isfinite(loss)) and bool(jnp.isfinite(err))
    assert 0.0 <= float(err) <= 1.0

    # inference path (no labels)
    probs_only, l2, e2 = network_forward(x, params)
    jax.block_until_ready(probs_only)
    assert l2 is None and e2 is None and probs_only.shape == (BATCH, OUT_SIZE)

    print("KERNEL_OK")
</pallas_src>

<mosaic_0001>
module attributes {stable_mosaic.version = 11 : i64} {
  func.func @_fused_mlp_kernel(%arg0: i32, %arg1: memref<32x64xbf16, #tpu.memory_space<vmem>>, %arg2: memref<32x1xi32, #tpu.memory_space<vmem>>, %arg3: memref<64x32xbf16, #tpu.memory_space<vmem>>, %arg4: memref<32x48xbf16, #tpu.memory_space<vmem>>, %arg5: memref<48x16xbf16, #tpu.memory_space<vmem>>, %arg6: memref<16x128xbf16, #tpu.memory_space<vmem>>, %arg7: memref<32x128xbf16, #tpu.memory_space<vmem>>, %arg8: memref<1x8x128xf32, #tpu.memory_space<vmem>>) attributes {dimension_semantics = [#tpu.dimension_semantics<parallel>], iteration_bounds = array<i64: 1>, scalar_prefetch = 0 : i64, scratch_operands = 0 : i64, tpu.core_type = #tpu.core_type<tc>, window_params = [{transform_indices = @transform_0, window_bounds = array<i64: 32, 64>}, {transform_indices = @transform_1, window_bounds = array<i64: 32, 1>}, {pipeline_mode = #tpu.pipeline_mode<synchronous>, transform_indices = @transform_2, window_bounds = array<i64: 64, 32>}, {pipeline_mode = #tpu.pipeline_mode<synchronous>, transform_indices = @transform_3, window_bounds = array<i64: 32, 48>}, {pipeline_mode = #tpu.pipeline_mode<synchronous>, transform_indices = @transform_4, window_bounds = array<i64: 48, 16>}, {pipeline_mode = #tpu.pipeline_mode<synchronous>, transform_indices = @transform_5, window_bounds = array<i64: 16, 128>}, {transform_indices = @transform_6, window_bounds = array<i64: 32, 128>}, {transform_indices = @transform_7, window_bounds = array<i64: 1, 8, 128>}]} {
    %c0 = arith.constant 0 : index
    %c0_0 = arith.constant 0 : index
    %0 = vector.load %arg1[%c0, %c0_0] : memref<32x64xbf16, #tpu.memory_space<vmem>>, vector<32x64xbf16>
    %c0_1 = arith.constant 0 : index
    %c0_2 = arith.constant 0 : index
    %1 = vector.load %arg2[%c0_1, %c0_2] : memref<32x1xi32, #tpu.memory_space<vmem>>, vector<32x1xi32>
    %c0_3 = arith.constant 0 : index
    %c0_4 = arith.constant 0 : index
    %2 = vector.load %arg3[%c0_3, %c0_4] : memref<64x32xbf16, #tpu.memory_space<vmem>>, vector<64x32xbf16>
    %cst = arith.constant dense<0.000000e+00> : vector<32x32xf32>
    %3 = tpu.matmul %0, %2, %cst {dimension_numbers = #tpu.dot_dimension_numbers<[1], [0], [0], [1], [0, 0, 1, 1], [], []>} : vector<32x64xbf16>, vector<64x32xbf16>, vector<32x32xf32> -> vector<32x32xf32>
    %cst_5 = arith.constant 0.000000e+00 : f32
    %4 = vector.broadcast %cst_5 : f32 to vector<32x32xf32>
    %5 = arith.maximumf %3, %4 : vector<32x32xf32>
    %6 = arith.truncf %5 : vector<32x32xf32> to vector<32x32xbf16>
    %c0_6 = arith.constant 0 : index
    %c0_7 = arith.constant 0 : index
    %7 = vector.load %arg4[%c0_6, %c0_7] : memref<32x48xbf16, #tpu.memory_space<vmem>>, vector<32x48xbf16>
    %cst_8 = arith.constant dense<0.000000e+00> : vector<32x48xf32>
    %8 = tpu.matmul %6, %7, %cst_8 {dimension_numbers = #tpu.dot_dimension_numbers<[1], [0], [0], [1], [0, 0, 1, 1], [], []>} : vector<32x32xbf16>, vector<32x48xbf16>, vector<32x48xf32> -> vector<32x48xf32>
    %cst_9 = arith.constant 0.000000e+00 : f32
    %9 = vector.broadcast %cst_9 : f32 to vector<32x48xf32>
    %10 = arith.maximumf %8, %9 : vector<32x48xf32>
    %11 = arith.truncf %10 : vector<32x48xf32> to vector<32x48xbf16>
    %c0_10 = arith.constant 0 : index
    %c0_11 = arith.constant 0 : index
    %12 = vector.load %arg5[%c0_10, %c0_11] : memref<48x16xbf16, #tpu.memory_space<vmem>>, vector<48x16xbf16>
    %cst_12 = arith.constant dense<0.000000e+00> : vector<32x16xf32>
    %13 = tpu.matmul %11, %12, %cst_12 {dimension_numbers = #tpu.dot_dimension_numbers<[1], [0], [0], [1], [0, 0, 1, 1], [], []>} : vector<32x48xbf16>, vector<48x16xbf16>, vector<32x16xf32> -> vector<32x16xf32>
    %cst_13 = arith.constant 0.000000e+00 : f32
    %14 = vector.broadcast %cst_13 : f32 to vector<32x16xf32>
    %15 = arith.maximumf %13, %14 : vector<32x16xf32>
    %16 = arith.truncf %15 : vector<32x16xf32> to vector<32x16xbf16>
    %c0_14 = arith.constant 0 : index
    %c0_15 = arith.constant 0 : index
    %17 = vector.load %arg6[%c0_14, %c0_15] : memref<16x128xbf16, #tpu.memory_space<vmem>>, vector<16x128xbf16>
    %cst_16 = arith.constant dense<0.000000e+00> : vector<32x128xf32>
    %18 = tpu.matmul %16, %17, %cst_16 {dimension_numbers = #tpu.dot_dimension_numbers<[1], [0], [0], [1], [0, 0, 1, 1], [], []>} : vector<32x16xbf16>, vector<16x128xbf16>, vector<32x128xf32> -> vector<32x128xf32>
    %19 = tpu.iota {dimensions = array<i32: 1>} : vector<32x128xi32>
    %c10_i32 = arith.constant 10 : i32
    %20 = vector.broadcast %c10_i32 : i32 to vector<32x128xi32>
    %21 = arith.cmpi slt, %19, %20 : vector<32x128xi32>
    %cst_17 = arith.constant -1.000000e+30 : f32
    %22 = vector.broadcast %cst_17 : f32 to vector<32x128xf32>
    %23 = arith.select %21, %18, %22 : vector<32x128xi1>, vector<32x128xf32>
    %cst_18 = arith.constant dense<0xFF800000> : vector<32xf32>
    %24 = vector.multi_reduction <maximumf>, %23, %cst_18 [1] : vector<32x128xf32> to vector<32xf32>
    %25 = vector.shape_cast %24 : vector<32xf32> to vector<32x1xf32>
    %26 = vector.broadcast %25 : vector<32x1xf32> to vector<32x128xf32>
    %27 = arith.subf %23, %26 : vector<32x128xf32>
    %28 = math.exp %27 : vector<32x128xf32>
    %cst_19 = arith.constant dense<0.000000e+00> : vector<32xf32>
    %29 = vector.multi_reduction <add>, %28, %cst_19 [1] : vector<32x128xf32> to vector<32xf32>
    %30 = vector.shape_cast %29 : vector<32xf32> to vector<32x1xf32>
    %31 = tpu.reciprocal %30 {approx = true} : vector<32x1xf32> -> vector<32x1xf32>
    %32 = arith.mulf %30, %31 : vector<32x1xf32>
    %cst_20 = arith.constant 2.000000e+00 : f32
    %33 = vector.broadcast %cst_20 : f32 to vector<32x1xf32>
    %34 = arith.subf %33, %32 : vector<32x1xf32>
    %35 = arith.mulf %31, %34 : vector<32x1xf32>
    %36 = vector.broadcast %35 : vector<32x1xf32> to vector<32x128xf32>
    %37 = arith.mulf %28, %36 : vector<32x128xf32>
    %38 = arith.truncf %37 : vector<32x128xf32> to vector<32x128xbf16>
    %c0_21 = arith.constant 0 : index
    %c0_22 = arith.constant 0 : index
    %39 = vector.load %arg7[%c0_21, %c0_22] : memref<32x128xbf16, #tpu.memory_space<vmem>>, vector<32x128xbf16>
    tpu.vector_store %arg7[%c0_21, %c0_22], %38 {strides = array<i32>} : memref<32x128xbf16, #tpu.memory_space<vmem>>, vector<32x128xbf16>,
    %40 = vector.broadcast %1 : vector<32x1xi32> to vector<32x128xi32>
    %41 = arith.cmpi eq, %19, %40 : vector<32x128xi32>
    %cst_23 = arith.constant -1.000000e+30 : f32
    %42 = vector.broadcast %cst_23 : f32 to vector<32x128xf32>
    %43 = arith.select %21, %37, %42 : vector<32x128xi1>, vector<32x128xf32>
    %cst_24 = arith.constant dense<0xFF800000> : vector<32xf32>
    %44 = vector.multi_reduction <maximumf>, %43, %cst_24 [1] : vector<32x128xf32> to vector<32xf32>
    %45 = vector.shape_cast %44 : vector<32xf32> to vector<32x1xf32>
    %46 = vector.broadcast %45 : vector<32x1xf32> to vector<32x128xf32>
    %47 = arith.subf %43, %46 : vector<32x128xf32>
    %48 = math.exp %47 : vector<32x128xf32>
    %cst_25 = arith.constant dense<0.000000e+00> : vector<32xf32>
    %49 = vector.multi_reduction <add>, %48, %cst_25 [1] : vector<32x128xf32> to vector<32xf32>
    %50 = vector.shape_cast %49 : vector<32xf32> to vector<32x1xf32>
    %51 = math.log %50 : vector<32x1xf32>
    %52 = arith.addf %45, %51 : vector<32x1xf32>
    %53 = vector.broadcast %52 : vector<32x1xf32> to vector<32x128xf32>
    %54 = arith.subf %37, %53 : vector<32x128xf32>
    %cst_26 = arith.constant 0.000000e+00 : f32
    %55 = vector.broadcast %cst_26 : f32 to vector<32x128xf32>
    %56 = arith.subf %55, %54 : vector<32x128xf32>
    %cst_27 = arith.constant 0.000000e+00 : f32
    %57 = vector.broadcast %cst_27 : f32 to vector<32x128xf32>
    %58 = arith.select %41, %56, %57 : vector<32x128xi1>, vector<32x128xf32>
    %59 = vector.shape_cast %58 : vector<32x128xf32> to vector<1x32x128xf32>
    %cst_28 = arith.constant dense<0.000000e+00> : vector<1xf32>
    %60 = vector.multi_reduction <add>, %59, %cst_28 [1, 2] : vector<1x32x128xf32> to vector<1xf32>
    %61 = vector.shape_cast %60 : vector<1xf32> to vector<1x1x1xf32>
    %62 = vector.extract %61[0, 0, 0] : f32 from vector<1x1x1xf32>
    %cst_29 = arith.constant 0.000000e+00 : f32
    %63 = vector.broadcast %cst_29 : f32 to vector<32x128xf32>
    %64 = arith.select %41, %37, %63 : vector<32x128xi1>, vector<32x128xf32>
    %cst_30 = arith.constant dense<0.000000e+00> : vector<32xf32>
    %65 = vector.multi_reduction <add>, %64, %cst_30 [1] : vector<32x128xf32> to vector<32xf32>
    %66 = vector.shape_cast %65 : vector<32xf32> to vector<32x1xf32>
    %67 = arith.cmpf oge, %66, %45 : vector<32x1xf32>
    %68 = arith.extui %67 : vector<32x1xi1> to vector<32x1xi32>
    %69 = arith.sitofp %68 : vector<32x1xi32> to vector<32x1xf32>
    %70 = vector.shape_cast %69 : vector<32x1xf32> to vector<1x32x1xf32>
    %cst_31 = arith.constant dense<0.000000e+00> : vector<1xf32>
    %71 = vector.multi_reduction <add>, %70, %cst_31 [1, 2] : vector<1x32x1xf32> to vector<1xf32>
    %72 = vector.shape_cast %71 : vector<1xf32> to vector<1x1x1xf32>
    %73 = vector.extract %72[0, 0, 0] : f32 from vector<1x1x1xf32>
    %74 = tpu.iota {dimensions = array<i32: 1>} : vector<1x8x128xi32>
    %75 = tpu.iota {dimensions = array<i32: 2>} : vector<1x8x128xi32>
    %c0_i32 = arith.constant 0 : i32
    %76 = vector.broadcast %c0_i32 : i32 to vector<1x8x128xi32>
    %77 = arith.cmpi eq, %74, %76 : vector<1x8x128xi32>
    %c0_i32_32 = arith.constant 0 : i32
    %78 = vector.broadcast %c0_i32_32 : i32 to vector<1x8x128xi32>
    %79 = arith.cmpi eq, %75, %78 : vector<1x8x128xi32>
    %80 = arith.andi %77, %79 : vector<1x8x128xi1>
    %c0_i32_33 = arith.constant 0 : i32
    %81 = vector.broadcast %c0_i32_33 : i32 to vector<1x8x128xi32>
    %82 = arith.cmpi eq, %74, %81 : vector<1x8x128xi32>
    %c1_i32 = arith.constant 1 : i32
    %83 = vector.broadcast %c1_i32 : i32 to vector<1x8x128xi32>
    %84 = arith.cmpi eq, %75, %83 : vector<1x8x128xi32>
    %85 = arith.andi %82, %84 : vector<1x8x128xi1>
    %cst_34 = arith.constant 0.000000e+00 : f32
    %86 = vector.broadcast %73 : f32 to vector<1x8x128xf32>
    %87 = vector.broadcast %cst_34 : f32 to vector<1x8x128xf32>
    %88 = arith.select %85, %86, %87 : vector<1x8x128xi1>, vector<1x8x128xf32>
    %89 = vector.broadcast %62 : f32 to vector<1x8x128xf32>
    %90 = arith.select %80, %89, %88 : vector<1x8x128xi1>, vector<1x8x128xf32>
    %c0_35 = arith.constant 0 : index
    %c0_36 = arith.constant 0 : index
    %c0_37 = arith.constant 0 : index
    %91 = vector.load %arg8[%c0_35, %c0_36, %c0_37] : memref<1x8x128xf32, #tpu.memory_space<vmem>>, vector<1x8x128xf32>
    tpu.vector_store %arg8[%c0_35, %c0_36, %c0_37], %90 {strides = array<i32>} : memref<1x8x128xf32, #tpu.memory_space<vmem>>, vector<1x8x128xf32>,
    return
  }
  func.func @transform_0(%arg0: i32) -> (i32, i32) {
    %c0_i32 = arith.constant 0 : i32
    %c0_i32_0 = arith.constant 0 : i32
    return %arg0, %c0_i32 : i32, i32
  }
  func.func @transform_1(%arg0: i32) -> (i32, i32) {
    %c0_i32 = arith.constant 0 : i32
    %c0_i32_0 = arith.constant 0 : i32
    return %arg0, %c0_i32 : i32, i32
  }
  func.func @transform_2(%arg0: i32) -> (i32, i32) {
    %c0_i32 = arith.constant 0 : i32
    %c0_i32_0 = arith.constant 0 : i32
    %c0_i32_1 = arith.constant 0 : i32
    return %c0_i32, %c0_i32_0 : i32, i32
  }
  func.func @transform_3(%arg0: i32) -> (i32, i32) {
    %c0_i32 = arith.constant 0 : i32
    %c0_i32_0 = arith.constant 0 : i32
    %c0_i32_1 = arith.constant 0 : i32
    return %c0_i32, %c0_i32_0 : i32, i32
  }
  func.func @transform_4(%arg0: i32) -> (i32, i32) {
    %c0_i32 = arith.constant 0 : i32
    %c0_i32_0 = arith.constant 0 : i32
    %c0_i32_1 = arith.constant 0 : i32
    return %c0_i32, %c0_i32_0 : i32, i32
  }
  func.func @transform_5(%arg0: i32) -> (i32, i32) {
    %c0_i32 = arith.constant 0 : i32
    %c0_i32_0 = arith.constant 0 : i32
    %c0_i32_1 = arith.constant 0 : i32
    return %c0_i32, %c0_i32_0 : i32, i32
  }
  func.func @transform_6(%arg0: i32) -> (i32, i32) {
    %c0_i32 = arith.constant 0 : i32
    %c0_i32_0 = arith.constant 0 : i32
    return %arg0, %c0_i32 : i32, i32
  }
  func.func @transform_7(%arg0: i32) -> (i32, i32, i32) {
    %c0_i32 = arith.constant 0 : i32
    %c0_i32_0 = arith.constant 0 : i32
    %c0_i32_1 = arith.constant 0 : i32
    return %arg0, %c0_i32, %c0_i32_0 : i32, i32, i32
  }
}

</mosaic_0001>

<bundles_post_ra>
// kernel: tpu_custom_call.1
= control target key start
LH: loop header
LB: loop body
LE: loop exit
PB: predicated region body
PF: predicated region fallthrough
CT: control target
= control target key end

     0   :  { %13 = vsyncpa [#allocation3], 0  ;;  %vm78_vm0 = vcmask 523264   ;;  %s1008_s0 = inlined_call_operand.vmem [shape: bf16[32,64], index: 0, kind: input, shape index: {}]   ;;  %s1009_s1 = inlined_call_operand.vmem [shape: s32[32,1], index: 1, kind: input, shape index: {}]   ;;  %s1010_s2 = inlined_call_operand.vmem [shape: bf16[64,32], index: 2, kind: input, shape index: {}]   ;;  %s1011_s3 = inlined_call_operand.vmem [shape: bf16[32,48], index: 3, kind: input, shape index: {}]   ;;  %s1012_s4 = inlined_call_operand.vmem [shape: bf16[48,16], index: 4, kind: input, shape index: {}]   ;;  %s1013_s5 = inlined_call_operand.vmem [shape: bf16[16,128], index: 5, kind: input, shape index: {}]   ;;  %s1014_s6 = inlined_call_operand.hbm [shape: bf16[32,128], index: 6, kind: output, shape index: {0}]   ;;  %s1015_s7 = inlined_call_operand.hbm [shape: f32[1,8,128], index: 7, kind: output, shape index: {1}]  }
   0x1   :  { %v719_v0 = vld [vmem:[%s1010_s2 + $0x18] sm:$0xff]   ;;  %v720_v1 = vld [vmem:[%s1010_s2 + $0x10] sm:$0xff]   ;;  %v721_v2 = vld [vmem:[%s1010_s2 + $0x8] sm:$0xff]  }
   0x2   :  { %671 = vmatprep.subr.bf16.mxu0 %v719_v0  ;;  %v723_v3 = vld [vmem:[%s1008_s0] sm:$0xff]  }
   0x3   :  { %672 = vmatpush3.bf16.msra.mxu0 %v719_v0  ;;  %v722_v4 = vld [vmem:[%s1010_s2] sm:$0xff]   ;;  %679 = vmatprep.mubr.msk.bf16.mxu0 %vm78_vm0, %v723_v3 }
   0x4   :  { %673 = vmatprep.subr.bf16.mxu0 %v720_v1 }
   0x7   :  { %674 = vmatpush3.bf16.msra.mxu0 %v720_v1 }
   0x8   :  { %675 = vmatprep.subr.bf16.mxu0 %v721_v2 }
   0x9   :  { %14 = vsyncpa [#allocation5], 0  ;;  %v724_v5 = vld [vmem:[%s1008_s0 + $0x8] sm:$0xff]   ;;  %v726_v7 = vld [vmem:[%s1011_s3] sm:$0xff]   ;;  %vm156_vm1 = vcmask 261120   ;;  %vm242_vm2 = vcmask 392192   ;;  %v368_v42 = vlaneseq }
   0xa   :  { %v725_v6 = vld [vmem:[%s1011_s3 + $0x8] sm:$0xff]   ;;  %v727_v18 = vld [vmem:[%s1012_s4 + $0x10] sm:$0xff]   ;;  %v729_v20 = vld [vmem:[%s1012_s4] sm:$0xff]   ;;  %vm312_vm3 = vcmask 130048   ;;  %vm551_vm11 = vcmask 7168  }
   0xb   :  { %676 = vmatpush3.bf16.msra.mxu0 %v721_v2  ;;  %683 = vmatprep.subr.bf16.mxu1 %v725_v6  ;;  %v728_v19 = vld [vmem:[%s1012_s4 + $0x8] sm:$0xff]   ;;  %v730_v31 = vld [vmem:[%s1013_s5] sm:$0xff]   ;;  %v890_v43 = vand.u32 127, %v368_v42 }
   0xc   :  { %677 = vmatprep.subr.bf16.mxu0 %v722_v4  ;;  %684 = vmatpush3.bf16.msra.mxu1 %v725_v6 }
   0xd   :  { %685 = vmatprep.subr.bf16.mxu1 %v726_v7  ;;  %vm370_vm4 = vcmp.lt.s32.totalorder %v890_v43, 10 }
   0xf   :  { %678 = vmatpush3.bf16.msra.mxu0 %v722_v4  ;;  %v807_v4 = vmov 0  }
  0x10   :  { %686 = vmatpush3.bf16.msra.mxu1 %v726_v7  ;;  %701 = vmatprep.subr.bf16.mxu0 %v730_v31 }
  0x11   :  { %691 = vmatprep.subr.bf16.mxu1 %v727_v18  ;;  %718 = vset.pattern.permute.xlu1 %v807_v4 }
  0x12   :  { %680 = vmatmul.mubr.msk.bf16.vlgmr.msra.gmra.mxu0 %vm78_vm0, %v724_v5  ;;  %717 = vset.pattern.permute.xlu0 %v807_v4 }
  0x13   :  { %702 = vmatpush3.bf16.msra.mxu0 %v730_v31 }
  0xd2   :  { %v681_v8 = vpop.f32.mrf.mxu0 }
  0xd3   :  { %v136_v15 = vmax.f32 %v681_v8, 0.0 }
  0xd4   :  { %v119_v9 = vpop.f32.mrf.mxu0 }
  0xd5   :  { %v134_v13 = vmax.f32 %v119_v9, 0.0 }
  0xd6   :  { %v682_v10 = vpop.f32.mrf.mxu0 }
  0xd7   :  { %v137_v11 = vmax.f32 %v682_v10, 0.0 }
  0xd8   :  { %v122_v12 = vpop.f32.mrf.mxu0 }
  0xd9   :  { %v135_v14 = vmax.f32 %v122_v12, 0.0  ;;  %v139_v17 = vpack.c.bf16 %v137_v11, %v136_v15 }
  0xdb   :  { %v138_v16 = vpack.c.bf16 %v135_v14, %v134_v13 }
  0xdd   :  { %687 = vmatprep.mubr.msk.bf16.mxu1 %vm156_vm1, %v138_v16 }
  0xde   :  { %688 = vmatmul.mubr.msk.bf16.vlgmr.msra.gmra.mxu1 %vm156_vm1, %v139_v17 }
  0xdf   :  { %692 = vmatpush3.bf16.msra.mxu1 %v727_v18 }
  0xe0   :  { %693 = vmatprep.subr.bf16.mxu1 %v728_v19 }
  0xe3   :  { %694 = vmatpush3.bf16.msra.mxu1 %v728_v19 }
  0xe4   :  { %695 = vmatprep.subr.bf16.mxu1 %v729_v20 }
  0xe7   :  { %696 = vmatpush3.bf16.msra.mxu1 %v729_v20 }
 0x19e   :  { %v689_v21 = vpop.f32.mrf.mxu1 }
 0x19f   :  { %v214_v28 = vmax.f32 %v689_v21, 0.0 }
 0x1a0   :  { %v197_v22 = vpop.f32.mrf.mxu1 }
 0x1a1   :  { %v212_v26 = vmax.f32 %v197_v22, 0.0 }
 0x1a2   :  { %v690_v23 = vpop.f32.mrf.mxu1 }
 0x1a3   :  { %v215_v24 = vmax.f32 %v690_v23, 0.0 }
 0x1a4   :  { %v200_v25 = vpop.f32.mrf.mxu1 }
 0x1a5   :  { %v213_v27 = vmax.f32 %v200_v25, 0.0  ;;  %v217_v30 = vpack.c.bf16 %v215_v24, %v214_v28 }
 0x1a7   :  { %v216_v29 = vpack.c.bf16 %v213_v27, %v212_v26 }
 0x1a9   :  { %697 = vmatprep.mubr.msk.bf16.mxu1 %vm242_vm2, %v216_v29 }
 0x1aa   :  { %698 = vmatmul.mubr.msk.bf16.vlgmr.msra.gmra.mxu1 %vm242_vm2, %v217_v30 }
 0x26a   :  { %v699_v32 = vpop.f32.mrf.mxu1 }
 0x26b   :  { %v300_v39 = vmax.f32 %v699_v32, 0.0 }
 0x26c   :  { %v283_v33 = vpop.f32.mrf.mxu1 }
 0x26d   :  { %v298_v37 = vmax.f32 %v283_v33, 0.0 }
 0x26e   :  { %v700_v34 = vpop.f32.mrf.mxu1 }
 0x26f   :  { %v301_v35 = vmax.f32 %v700_v34, 0.0 }
 0x270   :  { %v286_v36 = vpop.f32.mrf.mxu1 }
 0x271   :  { %v299_v38 = vmax.f32 %v286_v36, 0.0  ;;  %v303_v41 = vpack.c.bf16 %v301_v35, %v300_v39  ;;  %v33_v35 = vld [vmem:[%s1009_s1 + $0x8] sm:$0xff]  ;;  %v32_v36 = vld [vmem:[%s1009_s1] sm:$0xff] }
 0x273   :  { %v302_v40 = vpack.c.bf16 %v299_v38, %v298_v37  ;;  %v34_v37 = vld [vmem:[%s1009_s1 + $0x10] sm:$0xff]  ;;  %v35_v38 = vld [vmem:[%s1009_s1 + $0x18] sm:$0xff]  ;;  %s809_s1 = smov [#allocation2]  }
 0x274   :  { %s585_s28 = sshll.u32 %s809_s1, 4  ;;  %s586_s28 = int_to_ptr.vmem [resolvable:$true] %s585_s28 }
 0x275   :  { %703 = vmatprep.mubr.msk.bf16.mxu0 %vm312_vm3, %v302_v40  ;;  %s763_s29 = scalar_lea.vmem %s586_s28, 256  ;;  %p768_p1 = scmp.lt.s32.totalorder %s586_s28, %s586_s28 }
 0x276   :  { %704 = vmatmul.mubr.msk.bf16.vlgmr.msra.gmra.mxu0 %vm312_vm3, %v303_v41  ;;  %p764_p0 = scmp.ne.s32.totalorder %s586_s28, %s763_s29  ;;  %p769_p2 = scmp.lt.s32.totalorder %s763_s29, %s763_s29 }
 0x278   :  { %p770_p3 = por %p769_p2, %p768_p1 }
 0x27a   :  { %p771_p4 = pnand %p770_p3, %p764_p0 }
 0x336   :  { %v705_v44 = vpop.f32.mrf.mxu0 }
 0x337   :  { %v373_v45 = vsel %vm370_vm4, %v705_v44, -1e+30 }
 0x338   :  { %379 = vmax.xlane.f32.xlu1 %v373_v45  ;;  %v353_v46 = vpop.f32.mrf.mxu0 }
 0x339   :  { %v371_v47 = vsel %vm370_vm4, %v353_v46, -1e+30 }
 0x33a   :  { %375 = vmax.xlane.f32.xlu0 %v371_v47  ;;  %v706_v48 = vpop.f32.mrf.mxu0 }
 0x33b   :  { %v374_v49 = vsel %vm370_vm4, %v706_v48, -1e+30 }
 0x33c   :  { %381 = vmax.xlane.f32.xlu1 %v374_v49  ;;  %v356_v50 = vpop.f32.mrf.mxu0 }
 0x33d   :  { %v372_v51 = vsel %vm370_vm4, %v356_v50, -1e+30 }
 0x33e   :  { %377 = vmax.xlane.f32.xlu0 %v372_v51 }
 0x3c1   :  { %v380_v52 = vpop.xlane.xlu1 %379 }
 0x3c2   :  { %v385_v53 = vsub.f32 %v373_v45, %v380_v52 }
 0x3c3   :  { %v376_v54 = vpop.xlane.xlu0 %375 }
 0x3c4   :  { %v383_v55 = vsub.f32 %v371_v47, %v376_v54  ;;  %v391_v58 = vmul.f32 1.442695, %v385_v53 }
 0x3c5   :  { %v382_v56 = vpop.xlane.xlu1 %381 }
 0x3c6   :  { %v387_v57 = vmul.f32 1.442695, %v383_v55  ;;  %v386_v60 = vsub.f32 %v374_v49, %v382_v56 }
 0x3c7   :  { %v378_v59 = vpop.xlane.xlu0 %377 }
 0x3c8   :  { %731 = vpow2.f32 %v387_v57  ;;  %v384_v61 = vsub.f32 %v372_v51, %v378_v59  ;;  %v393_v63 = vmul.f32 1.442695, %v386_v60 }
 0x3c9   :  { %733 = vpow2.f32 %v391_v58 }
 0x3ca   :  { %v389_v62 = vmul.f32 1.442695, %v384_v61 }
 0x3cc   :  { %735 = vpow2.f32 %v389_v62 }
 0x3cd   :  { %737 = vpow2.f32 %v393_v63 }
 0x3d5   :  { %v732_v0 = vpop.eup %731 }
 0x3d6   :  { %395 = vadd.xlane.f32.xlu0 %v732_v0  ;;  %v734_v1 = vpop.eup %733 }
 0x3d9   :  { %v736_v2 = vpop.eup %735 }
 0x3da   :  { %399 = vadd.xlane.f32.xlu0 %v734_v1  ;;  %397 = vadd.xlane.f32.xlu1 %v736_v2  ;;  %v738_v3 = vpop.eup %737 }
 0x3de   :  { %401 = vadd.xlane.f32.xlu1 %v738_v3 }
 0x45f   :  { %v396_v5 = vpop.xlane.xlu0 %395 }
 0x460   :  { %739 = vrcp.f32 %v396_v5 }
 0x463   :  { %v398_v6 = vpop.xlane.xlu1 %397  ;;  %v400_v7 = vpop.xlane.xlu0 %399 }
 0x464   :  { %741 = vrcp.f32 %v398_v6 }
 0x465   :  { %743 = vrcp.f32 %v400_v7 }
 0x467   :  { %v402_v8 = vpop.xlane.xlu1 %401 }
 0x468   :  { %745 = vrcp.f32 %v402_v8 }
 0x46d   :  { %v740_v9 = vpop.eup %739 }
 0x46e   :  { %v407_v10 = vmul.f32 %v740_v9, %v396_v5 }
 0x470   :  { %v411_v11 = vsub.f32 2.0, %v407_v10  ;;  %v808_v10 = vmov 0.0  }
 0x471   :  { %v742_v12 = vpop.eup %741 }
 0x472   :  { %v744_v13 = vpop.eup %743  ;;  %v415_v14 = vmul.f32 %v740_v9, %v411_v11  ;;  %v408_v15 = vmul.f32 %v742_v12, %v398_v6 }
 0x473   :  { %v409_v16 = vmul.f32 %v744_v13, %v400_v7 }
 0x474   :  { %v901_v17 = vmul.f32 %v732_v0, %v415_v14  ;;  %v412_v18 = vsub.f32 2.0, %v408_v15 }
 0x475   :  { %v746_v19 = vpop.eup %745  ;;  %v413_v20 = vsub.f32 2.0, %v409_v16 }
 0x476   :  { %v416_v21 = vmul.f32 %v742_v12, %v412_v18  ;;  %v410_v22 = vmul.f32 %v746_v19, %v402_v8  ;;  %v459_v23 = vsel %vm370_vm4, %v901_v17, -1e+30 }
 0x477   :  { %v417_v24 = vmul.f32 %v744_v13, %v413_v20  ;;  %463 = vmax.xlane.f32.xlu0 %v459_v23 }
 0x478   :  { %v906_v25 = vmul.f32 %v736_v2, %v416_v21  ;;  %v414_v26 = vsub.f32 2.0, %v410_v22 }
 0x479   :  { %v908_v27 = vmul.f32 %v734_v1, %v417_v24 }
 0x47a   :  { %v418_v28 = vmul.f32 %v746_v19, %v414_v26  ;;  %v460_v29 = vsel %vm370_vm4, %v906_v25, -1e+30  ;;  %v645_v30 = vpack.c.bf16 %v906_v25, %v901_v17 }
 0x47b   :  { %465 = vmax.xlane.f32.xlu1 %v460_v29  ;;  %v461_v31 = vsel %vm370_vm4, %v908_v27, -1e+30 }
 0x47c   :  { %v918_v32 = vmul.f32 %v738_v3, %v418_v28  ;;  %467 = vmax.xlane.f32.xlu0 %v461_v31  ;;  %646 = vst [vmem:[#allocation2] sm:$0xff] %v645_v30  }
 0x47e   :  { %v462_v33 = vsel %vm370_vm4, %v918_v32, -1e+30  ;;  %v650_v34 = vpack.c.bf16 %v918_v32, %v908_v27 }
 0x47f   :  { %469 = vmax.xlane.f32.xlu1 %v462_v33 }
 0x480   :  { %652 = vst [vmem:[#allocation2 + $0x8] sm:$0xff] %v650_v34  }
 0x490   :  { %447 = vperm.xlu1 %718, %v33_v35  }
 0x492   :  { %444 = vperm.xlu0 %717, %v32_v36  }
 0x494   :  { %450 = vperm.xlu1 %718, %v34_v37  }
 0x498   :  { %453 = vperm.xlu1 %718, %v35_v38  }
 0x500   :  { %v464_v39 = vpop.xlane.xlu0 %463 }
 0x501   :  { %v471_v40 = vsub.f32 %v459_v23, %v464_v39 }
 0x503   :  { %v475_v41 = vmul.f32 1.442695, %v471_v40 }
 0x504   :  { %v937_v44 = vpop.xlane.xlu1 %465 }
 0x505   :  { %747 = vpow2.f32 %v475_v41  ;;  %v472_v45 = vsub.f32 %v460_v29, %v937_v44  ;;  %v940_v46 = vpop.xlane.xlu0 %467 }
 0x506   :  { %v473_v47 = vsub.f32 %v461_v31, %v940_v46 }
 0x507   :  { %v477_v48 = vmul.f32 1.442695, %v472_v45 }
 0x508   :  { %v479_v49 = vmul.f32 1.442695, %v473_v47  ;;  %v943_v50 = vpop.xlane.xlu1 %469 }
 0x509   :  { %749 = vpow2.f32 %v477_v48  ;;  %v474_v51 = vsub.f32 %v462_v33, %v943_v50 }
 0x50a   :  { %751 = vpow2.f32 %v479_v49 }
 0x50b   :  { %v481_v52 = vmul.f32 1.442695, %v474_v51 }
 0x50c   :  { %v946_v53 = vpop.permute.xlu1 %447 }
 0x50d   :  { %753 = vpow2.f32 %v481_v52  ;;  %v952_v58 = vpop.permute.xlu0 %444  ;;  %vm456_vm7 = vcmp.eq.s32.totalorder %v890_v43, %v946_v53 }
 0x50e   :  { %vm455_vm6 = vcmp.eq.s32.totalorder %v890_v43, %v952_v58  ;;  %v528_v63 = vsel %vm456_vm7, %v906_v25, 0.0 }
 0x50f   :  { %v527_v61 = vsel %vm455_vm6, %v901_v17, 0.0 }
 0x510   :  { %v948_v55 = vpop.permute.xlu1 %450 }
 0x511   :  { %vm457_vm5 = vcmp.eq.s32.totalorder %v890_v43, %v948_v55 }
 0x512   :  { %v748_v54 = vpop.eup %747  ;;  %v529_v60 = vsel %vm457_vm5, %v908_v27, 0.0 }
 0x513   :  { %483 = vadd.xlane.f32.xlu1 %v748_v54 }
 0x514   :  { %v454_v62 = vpop.permute.xlu1 %453 }
 0x515   :  { %vm458_vm8 = vcmp.eq.s32.totalorder %v890_v43, %v454_v62 }
 0x516   :  { %v750_v56 = vpop.eup %749  ;;  %v530_v0 = vsel %vm458_vm8, %v918_v32, 0.0 }
 0x517   :  { %v752_v57 = vpop.eup %751  ;;  %485 = vadd.xlane.f32.xlu0 %v750_v56 }
 0x518   :  { %487 = vadd.xlane.f32.xlu1 %v752_v57 }
 0x51a   :  { %v754_v59 = vpop.eup %753 }
 0x51b   :  { %535 = vadd.xlane.f32.xlu0 %v529_v60 }
 0x51c   :  { %489 = vadd.xlane.f32.xlu1 %v754_v59 }
 0x520   :  { %531 = vadd.xlane.f32.xlu1 %v527_v61 }
 0x524   :  { %533 = vadd.xlane.f32.xlu1 %v528_v63 }
 0x528   :  { %537 = vadd.xlane.f32.xlu1 %v530_v0 }
 0x59c   :  { %v484_v1 = vpop.xlane.xlu1 %483 }
 0x59d   :  { %755 = vlog2.f32 %v484_v1 }
 0x5a0   :  { %v486_v2 = vpop.xlane.xlu0 %485 }
 0x5a1   :  { %v488_v3 = vpop.xlane.xlu1 %487  ;;  %757 = vlog2.f32 %v486_v2 }
 0x5a2   :  { %759 = vlog2.f32 %v488_v3 }
 0x5a4   :  { %v536_v5 = vpop.xlane.xlu0 %535 }
 0x5a5   :  { %v490_v4 = vpop.xlane.xlu1 %489  ;;  %vm541_vm10 = vcmp.ge.f32.partialorder %v536_v5, %v940_v46 }
 0x5a6   :  { %761 = vlog2.f32 %v490_v4  ;;  %v636_v18 = vsel %vm541_vm10, 1.0, %v808_v10 }
 0x5a7   :  { %v555_v29 = vsel %vm551_vm11, %v636_v18, 0.0 }
 0x5a9   :  { %v532_v6 = vpop.xlane.xlu1 %531 }
 0x5aa   :  { %v756_v7 = vpop.eup %755  ;;  %vm539_vm9 = vcmp.ge.f32.partialorder %v532_v6, %v464_v39 }
 0x5ab   :  { %v492_v8 = vmul.f32 0.6931472, %v756_v7  ;;  %v634_v11 = vsel %vm539_vm9, 1.0, %v808_v10 }
 0x5ac   :  { %v552_v21 = vsel %vm551_vm11, %v634_v11, 0.0 }
 0x5ad   :  { %v499_v9 = vadd.f32 %v492_v8, %v464_v39  ;;  %v534_v12 = vpop.xlane.xlu1 %533 }
 0x5ae   :  { %v758_v13 = vpop.eup %757  ;;  %vm540_vm12 = vcmp.ge.f32.partialorder %v534_v12, %v937_v44 }
 0x5af   :  { %v760_v14 = vpop.eup %759  ;;  %v503_v15 = vsub.f32 %v901_v17, %v499_v9  ;;  %v494_v16 = vmul.f32 0.6931472, %v758_v13  ;;  %v635_v19 = vsel %vm540_vm12, 1.0, %v808_v10 }
 0x5b0   :  { %v496_v20 = vmul.f32 0.6931472, %v760_v14  ;;  %v553_v22 = vsel %vm551_vm11, %v635_v19, 0.0 }
 0x5b1   :  { %v500_v23 = vadd.f32 %v494_v16, %v937_v44  ;;  %v554_v24 = vadd.f32 %v553_v22, %v552_v21  ;;  %v538_v26 = vpop.xlane.xlu1 %537  ;;  %v507_v34 = vsub.f32 0.0, %v503_v15 }
 0x5b2   :  { %v501_v28 = vadd.f32 %v496_v20, %v940_v46  ;;  %vm542_vm13 = vcmp.ge.f32.partialorder %v538_v26, %v943_v50 }
 0x5b3   :  { %v762_v30 = vpop.eup %761  ;;  %v504_v17 = vsub.f32 %v906_v25, %v500_v23  ;;  %v637_v31 = vsel %vm542_vm13, 1.0, %v808_v10  ;;  %v556_v33 = vadd.f32 %v555_v29, %v554_v24  ;;  %v511_v44 = vsel %vm455_vm6, %v507_v34, 0.0 }
 0x5b4   :  { %v498_v35 = vmul.f32 0.6931472, %v762_v30  ;;  %v557_v36 = vsel %vm551_vm11, %v637_v31, 0.0  ;;  %v505_v37 = vsub.f32 %v908_v27, %v501_v28 }
 0x5b5   :  { %v558_v38 = vadd.f32 %v557_v36, %v556_v33  ;;  %v508_v39 = vsub.f32 0.0, %v504_v17 }
 0x5b6   :  { %v502_v40 = vadd.f32 %v498_v35, %v943_v50  ;;  %v509_v41 = vsub.f32 0.0, %v505_v37 }
 0x5b7   :  { %559 = vadd.xlane.f32.xlu1 %v558_v38  ;;  %v512_v25 = vsel %vm456_vm7, %v508_v39, 0.0 }
 0x5b8   :  { %v506_v45 = vsub.f32 %v918_v32, %v502_v40  ;;  %v515_v46 = vadd.f32 %v512_v25, %v511_v44  ;;  %v513_v27 = vsel %vm457_vm5, %v509_v41, 0.0 }
 0x5ba   :  { %v510_v47 = vsub.f32 0.0, %v506_v45  ;;  %v516_v48 = vadd.f32 %v515_v46, %v513_v27 }
 0x5bc   :  { %v514_v49 = vsel %vm458_vm8, %v510_v47, 0.0 }
 0x5bd   :  { %v517_v50 = vadd.f32 %v516_v48, %v514_v49 }
 0x5bf   :  { %518 = vadd.xlane.f32.xlu0 %v517_v50 }
 0x5c0   :  { %774 = shalt.err (!%p771_p4)
}
 0x5c1   :  { %s810_s30 = smov 64   ;;  %s811_s8 = smov 4   ;;  %v569_v0 = vshrl.u32 %v368_v42, 7  ;;  %vm573_vm15 = vcmp.eq.s32.totalorder %v890_v43, 1  ;;  %vm571_vm0 = vcmp.eq.s32.totalorder %v890_v43, 0 }
 0x5c2   :  { %591 = dma.vmem_to_hbm [thread:$0]  %s586_s28, 256, %s1014_s6, [#allocation3], %s810_s30, %s810_s30, %s811_s8  }
 0x5c3   :  { %vm570_vm14 = vcmp.eq.s32.totalorder %v569_v0, 0  ;;  %s812_s11 = smov [#allocation4]  }
 0x5c4   :  { %vm574_vm1 = vmand %vm570_vm14, %vm573_vm15  ;;  %s598_s12 = sshll.u32 %s812_s11, 4  ;;  %s599_s12 = int_to_ptr.vmem [resolvable:$true] %s598_s12 }
 0x5c5   :  { %vm572_vm2 = vmand %vm570_vm14, %vm571_vm0  ;;  %s783_s14 = scalar_lea.vmem %s599_s12, 128  ;;  %p788_p6 = scmp.lt.s32.totalorder %s599_s12, %s599_s12 }
 0x5c6   :  { %p784_p5 = scmp.ne.s32.totalorder %s599_s12, %s783_s14  ;;  %p789_p7 = scmp.lt.s32.totalorder %s783_s14, %s783_s14 }
 0x5c8   :  { %p790_p8 = por %p789_p7, %p788_p6 }
 0x5ca   :  { %p791_p9 = pnand %p790_p8, %p784_p5 }
 0x640   :  { %v560_v32 = vpop.xlane.xlu1 %559 }
 0x641   :  { %v561_v51 = vrot.slane %v560_v32, 4 }
 0x643   :  { %v562_v52 = vadd.f32 %v561_v51, %v560_v32 }
 0x645   :  { %v563_v53 = vrot.slane %v562_v52, 2 }
 0x647   :  { %v564_v57 = vadd.f32 %v563_v53, %v562_v52 }
 0x648   :  { %v519_v54 = vpop.xlane.xlu0 %518 }
 0x649   :  { %v520_v55 = vrot.slane %v519_v54, 4  ;;  %v565_v60 = vrot.slane %v564_v57, 1 }
 0x64b   :  { %v521_v56 = vadd.f32 %v520_v55, %v519_v54  ;;  %v566_v63 = vadd.f32 %v565_v60, %v564_v57 }
 0x64d   :  { %v522_v58 = vrot.slane %v521_v56, 2 }
 0x64f   :  { %v523_v59 = vadd.f32 %v522_v58, %v521_v56 }
 0x651   :  { %v524_v61 = vrot.slane %v523_v59, 1 }
 0x653   :  { %v525_v62 = vadd.f32 %v524_v61, %v523_v59 }
 0x655   :  { %707 = vpush %v525_v62 }
 0x656   :  { %709 = vpush %v566_v63 }
 0x686   :  { %s708_s6 = spop %707 }
 0x687   :  { %v577_v1 = vstv %s708_s6  ;;  %s710_s13 = spop %709 }
 0x688   :  { %v575_v2 = vstv %s710_s13 }
 0x689   :  { %v576_v3 = vsel %vm574_vm1, %v575_v2, 0.0 }
 0x68a   :  { %v578_v4 = vsel %vm572_vm2, %v577_v1, %v576_v3 }
 0x68b   :  { %579 = vst [vmem:[#allocation4] sm:$0xff] %v578_v4 }
 0x68c   :  { %794 = shalt.err (!%p791_p9)
}
 0x68d   :  { %601 = dma.vmem_to_hbm [thread:$0]  %s599_s12, 128, %s1015_s7, [#allocation5]  }
 0x68e   :  { %803 = dma.done.wait [#allocation3], 256  }
 0x68f   :  { %804 = vsyncadd [#allocation3], 4294967040 }
 0x690   :  { %805 = dma.done.wait [#allocation5], 128  }
 0x691   :  { %806 = vsyncadd [#allocation5], 4294967168 }
 0x692   :  { %608 = vsyncpa [#allocation3], 1 }
 0x693   :  { %609 = vsyncpa [#allocation5], 1 }

</bundles_post_ra>
